<compile_context>
chip_gen: v5e
topology: v5e:2x2
jax: 0.10.0
libtpu: 0.0.40
codegen_flags: <defaults>
</compile_context>

<pallas_src>
import jax
import jax.numpy as jnp
from jax.experimental import pallas as pl
from jax.experimental.pallas import tpu as pltpu


def _round_up(n, m):
    return ((n + m - 1) // m) * m


def _lstm_kernel(x_ref, wih_ref, whh_ref, b_ref, wfc_ref, bfc_ref, o_ref, xg_scr):
    """Whole-sequence LSTM + fused fc, single invocation (no grid).

    x_ref   : (T*Bp, D)   time-major, batch-padded input (flattened)
    wih_ref : (D, 4H)     W_ih^T
    whh_ref : (H, 4H)     W_hh^T
    b_ref   : (1, 4H)     bias_ih + bias_hh
    wfc_ref : (H, Op)     fc.weight^T, lane-padded
    bfc_ref : (1, Op)     fc.bias, lane-padded
    o_ref   : (Bp, Op)    output
    xg_scr  : (T*Bp, 4H)  VMEM scratch holding the hoisted input projection
    """
    TB, _ = x_ref.shape
    H = whh_ref.shape[0]
    Bp = o_ref.shape[0]
    T = TB // Bp

    # ---- Hoisted input projection: one large MXU matmul for all timesteps. ----
    xg_scr[...] = (
        jnp.dot(x_ref[...], wih_ref[...], preferred_element_type=jnp.float32)
        + b_ref[...]
    )

    # Recurrent weight stays resident in vregs across the loop.
    w_hh = whh_ref[...]

    # PyTorch gate order [i, f, g, o]: g-gate lanes get tanh, the rest sigmoid.
    # Hoisted out of the loop (JAX does not CSE broadcasts across iterations).
    lane = jax.lax.broadcasted_iota(jnp.int32, (Bp, 4 * H), 1)
    g_lane = (lane >= 2 * H) & (lane < 3 * H)

    def step(t, carry):
        h, c = carry
        off = pl.multiple_of(t * Bp, 8)          # aligned sublane offset
        gates = xg_scr[pl.ds(off, Bp), :] + jnp.dot(
            h, w_hh, preferred_element_type=jnp.float32
        )
        # Full-width EUP ops + lane select instead of four sub-128-lane chunks.
        act = jnp.where(g_lane, jnp.tanh(gates), jax.nn.sigmoid(gates))
        i_g = act[:, 0 * H:1 * H]
        f_g = act[:, 1 * H:2 * H]
        g_g = act[:, 2 * H:3 * H]
        o_g = act[:, 3 * H:4 * H]
        c_new = f_g * c + i_g * g_g
        h_new = o_g * jnp.tanh(c_new)
        return h_new, c_new

    h0 = jnp.zeros((Bp, H), jnp.float32)
    c0 = jnp.zeros((Bp, H), jnp.float32)
    # Unrolled so the LLO scheduler can overlap loads / adds under the serial
    # MXU -> EUP dependency chain.
    h_last, _ = jax.lax.fori_loop(0, T, step, (h0, c0), unroll=True)

    # Fused fc projection of the last hidden state (lane-dense padded output).
    y = jnp.dot(h_last, wfc_ref[...], preferred_element_type=jnp.float32)
    o_ref[...] = (y + bfc_ref[...]).astype(o_ref.dtype)


def lstm_forward(x, w_ih_t, w_hh_t, b_gates, w_fc_t, b_fc):
    """LSTMModel forward.

    x        : (B, T, D)  float32
    w_ih_t   : (D, 4H)    = PyTorch weight_ih_l0 transposed
    w_hh_t   : (H, 4H)    = PyTorch weight_hh_l0 transposed
    b_gates  : (1, 4H)    = bias_ih_l0 + bias_hh_l0
    w_fc_t   : (H, O)     = fc.weight transposed
    b_fc     : (1, O)     = fc.bias
    returns  : (B, O)
    """
    B, T, D = x.shape
    H = w_hh_t.shape[0]
    O = w_fc_t.shape[1]

    Bp = _round_up(B, 8)       # sublane-aligned batch
    Op = _round_up(O, 128)     # lane-dense fc output (unmasked final store)

    # Time-major, batch-padded, flattened to (T*Bp, D) so per-step slices are
    # aligned (Bp, D) sublane tiles inside the kernel.
    x_tm = jnp.transpose(x, (1, 0, 2))                            # (T, B, D)
    x_tm = jnp.pad(x_tm, ((0, 0), (0, Bp - B), (0, 0)))           # (T, Bp, D)
    x2d = x_tm.reshape(T * Bp, D)

    w_fc_p = jnp.pad(w_fc_t, ((0, 0), (0, Op - O)))               # (H, Op)
    b_fc_p = jnp.pad(b_fc, ((0, 0), (0, Op - O)))                 # (1, Op)

    vmem = pltpu.MemorySpace.VMEM
    out = pl.pallas_call(
        _lstm_kernel,
        out_shape=jax.ShapeDtypeStruct((Bp, Op), jnp.float32),
        in_specs=[pl.BlockSpec(memory_space=vmem)] * 6,
        out_specs=pl.BlockSpec(memory_space=vmem),
        scratch_shapes=[pltpu.VMEM((T * Bp, 4 * H), jnp.float32)],
    )(x2d, w_ih_t, w_hh_t, b_gates, w_fc_p, b_fc_p)

    return out[:B, :O]


def _lstm_reference(x, w_ih_t, w_hh_t, b_gates, w_fc_t, b_fc):
    """Pure-JAX reference matching PyTorch LSTM semantics (gate order i,f,g,o)."""
    B, T, D = x.shape
    H = w_hh_t.shape[0]
    h = jnp.zeros((B, H), jnp.float32)
    c = jnp.zeros((B, H), jnp.float32)
    for t in range(T):
        gates = x[:, t, :] @ w_ih_t + h @ w_hh_t + b_gates
        i_g = jax.nn.sigmoid(gates[:, 0 * H:1 * H])
        f_g = jax.nn.sigmoid(gates[:, 1 * H:2 * H])
        g_g = jnp.tanh(gates[:, 2 * H:3 * H])
        o_g = jax.nn.sigmoid(gates[:, 3 * H:4 * H])
        c = f_g * c + i_g * g_g
        h = o_g * jnp.tanh(c)
    return h @ w_fc_t + b_fc


if __name__ == "__main__":
    key = jax.random.PRNGKey(0)
    k_x, k_wih, k_whh, k_bih, k_bhh, k_wfc, k_bfc = jax.random.split(key, 7)

    batch = 2
    seq_len = 8
    input_size = 16
    hidden_size = 32
    output_size = 4

    # Deterministic params mimicking PyTorch's U(-1/sqrt(H), 1/sqrt(H)) init,
    # stored pre-transposed / pre-combined for the kernel.
    bound = 1.0 / jnp.sqrt(jnp.float32(hidden_size))
    w_ih_t = jax.random.uniform(k_wih, (input_size, 4 * hidden_size), jnp.float32, -bound, bound)
    w_hh_t = jax.random.uniform(k_whh, (hidden_size, 4 * hidden_size), jnp.float32, -bound, bound)
    b_ih = jax.random.uniform(k_bih, (1, 4 * hidden_size), jnp.float32, -bound, bound)
    b_hh = jax.random.uniform(k_bhh, (1, 4 * hidden_size), jnp.float32, -bound, bound)
    b_gates = b_ih + b_hh
    w_fc_t = jax.random.uniform(k_wfc, (hidden_size, output_size), jnp.float32, -bound, bound)
    b_fc = jax.random.uniform(k_bfc, (1, output_size), jnp.float32, -bound, bound)

    x = jax.random.normal(k_x, (batch, seq_len, input_size), jnp.float32)

    y = lstm_forward(x, w_ih_t, w_hh_t, b_gates, w_fc_t, b_fc)
    y = jax.block_until_ready(y)

    y_ref = _lstm_reference(x, w_ih_t, w_hh_t, b_gates, w_fc_t, b_fc)

    assert y.shape == (batch, output_size)
    assert jnp.allclose(y, y_ref, atol=1e-4, rtol=1e-4), (
        f"mismatch: max abs err = {jnp.max(jnp.abs(y - y_ref))}"
    )

    print("KERNEL_OK")
</pallas_src>

<mosaic_0001>
module attributes {stable_mosaic.version = 11 : i64} {
  func.func @_lstm_kernel(%arg0: memref<64x16xf32, #tpu.memory_space<vmem>>, %arg1: memref<16x128xf32, #tpu.memory_space<vmem>>, %arg2: memref<32x128xf32, #tpu.memory_space<vmem>>, %arg3: memref<1x128xf32, #tpu.memory_space<vmem>>, %arg4: memref<32x128xf32, #tpu.memory_space<vmem>>, %arg5: memref<1x128xf32, #tpu.memory_space<vmem>>, %arg6: memref<8x128xf32, #tpu.memory_space<vmem>>, %arg7: memref<64x128xf32, #tpu.memory_space<vmem>>) attributes {dimension_semantics = [], scalar_prefetch = 0 : i64, scratch_operands = 1 : i64, tpu.core_type = #tpu.core_type<tc>} {
    %c0 = arith.constant 0 : index
    %c0_0 = arith.constant 0 : index
    %0 = vector.load %arg0[%c0, %c0_0] : memref<64x16xf32, #tpu.memory_space<vmem>>, vector<64x16xf32>
    %c0_1 = arith.constant 0 : index
    %c0_2 = arith.constant 0 : index
    %1 = vector.load %arg1[%c0_1, %c0_2] : memref<16x128xf32, #tpu.memory_space<vmem>>, vector<16x128xf32>
    %cst = arith.constant dense<0.000000e+00> : vector<64x128xf32>
    %2 = tpu.matmul %0, %1, %cst {dimension_numbers = #tpu.dot_dimension_numbers<[1], [0], [0], [1], [0, 0, 1, 1], [], []>} : vector<64x16xf32>, vector<16x128xf32>, vector<64x128xf32> -> vector<64x128xf32>
    %c0_3 = arith.constant 0 : index
    %c0_4 = arith.constant 0 : index
    %3 = vector.load %arg3[%c0_3, %c0_4] : memref<1x128xf32, #tpu.memory_space<vmem>>, vector<1x128xf32>
    %4 = vector.broadcast %3 : vector<1x128xf32> to vector<64x128xf32>
    %5 = arith.addf %2, %4 : vector<64x128xf32>
    %c0_5 = arith.constant 0 : index
    %c0_6 = arith.constant 0 : index
    %6 = vector.load %arg7[%c0_5, %c0_6] : memref<64x128xf32, #tpu.memory_space<vmem>>, vector<64x128xf32>
    tpu.vector_store %arg7[%c0_5, %c0_6], %5 {strides = array<i32>} : memref<64x128xf32, #tpu.memory_space<vmem>>, vector<64x128xf32>,
    %c0_7 = arith.constant 0 : index
    %c0_8 = arith.constant 0 : index
    %7 = vector.load %arg2[%c0_7, %c0_8] : memref<32x128xf32, #tpu.memory_space<vmem>>, vector<32x128xf32>
    %8 = tpu.iota {dimensions = array<i32: 1>} : vector<8x128xi32>
    %c64_i32 = arith.constant 64 : i32
    %9 = vector.broadcast %c64_i32 : i32 to vector<8x128xi32>
    %10 = arith.cmpi sge, %8, %9 : vector<8x128xi32>
    %c96_i32 = arith.constant 96 : i32
    %11 = vector.broadcast %c96_i32 : i32 to vector<8x128xi32>
    %12 = arith.cmpi slt, %8, %11 : vector<8x128xi32>
    %13 = arith.andi %10, %12 : vector<8x128xi1>
    %cst_9 = arith.constant 0.000000e+00 : f32
    %14 = vector.broadcast %cst_9 : f32 to vector<8x32xf32>
    %cst_10 = arith.constant 0.000000e+00 : f32
    %15 = vector.broadcast %cst_10 : f32 to vector<8x32xf32>
    %c0_i32 = arith.constant 0 : i32
    %c8_i32 = arith.constant 8 : i32
    %16 = arith.muli %c0_i32, %c8_i32 : i32
    %17 = tpu.assume_multiple %16, 8 : i32
    %18 = arith.index_cast %17 : i32 to index
    %c0_11 = arith.constant 0 : index
    %19 = vector.load %arg7[%18, %c0_11] : memref<64x128xf32, #tpu.memory_space<vmem>>, vector<8x128xf32>
    %cst_12 = arith.constant dense<0.000000e+00> : vector<8x128xf32>
    %20 = tpu.matmul %14, %7, %cst_12 {dimension_numbers = #tpu.dot_dimension_numbers<[1], [0], [0], [1], [0, 0, 1, 1], [], []>} : vector<8x32xf32>, vector<32x128xf32>, vector<8x128xf32> -> vector<8x128xf32>
    %21 = arith.addf %19, %20 : vector<8x128xf32>
    %22 = math.tanh %21 : vector<8x128xf32>
    %23 = arith.negf %21 : vector<8x128xf32>
    %24 = math.exp %23 : vector<8x128xf32>
    %cst_13 = arith.constant 1.000000e+00 : f32
    %25 = vector.broadcast %cst_13 : f32 to vector<8x128xf32>
    %26 = arith.addf %25, %24 : vector<8x128xf32>
    %27 = arith.divf %25, %26 : vector<8x128xf32>
    %28 = arith.select %13, %22, %27 : vector<8x128xi1>, vector<8x128xf32>
    %29 = vector.extract_strided_slice %28 {offsets = [0, 0], sizes = [8, 32], strides = [1, 1]} : vector<8x128xf32> to vector<8x32xf32>
    %30 = vector.extract_strided_slice %28 {offsets = [0, 32], sizes = [8, 32], strides = [1, 1]} : vector<8x128xf32> to vector<8x32xf32>
    %31 = vector.extract_strided_slice %28 {offsets = [0, 64], sizes = [8, 32], strides = [1, 1]} : vector<8x128xf32> to vector<8x32xf32>
    %32 = vector.extract_strided_slice %28 {offsets = [0, 96], sizes = [8, 32], strides = [1, 1]} : vector<8x128xf32> to vector<8x32xf32>
    %33 = arith.mulf %30, %15 : vector<8x32xf32>
    %34 = arith.mulf %29, %31 : vector<8x32xf32>
    %35 = arith.addf %33, %34 : vector<8x32xf32>
    %36 = math.tanh %35 : vector<8x32xf32>
    %37 = arith.mulf %32, %36 : vector<8x32xf32>
    %c1_i32 = arith.constant 1 : i32
    %c8_i32_14 = arith.constant 8 : i32
    %38 = arith.muli %c1_i32, %c8_i32_14 : i32
    %39 = tpu.assume_multiple %38, 8 : i32
    %40 = arith.index_cast %39 : i32 to index
    %c0_15 = arith.constant 0 : index
    %41 = vector.load %arg7[%40, %c0_15] : memref<64x128xf32, #tpu.memory_space<vmem>>, vector<8x128xf32>
    %cst_16 = arith.constant dense<0.000000e+00> : vector<8x128xf32>
    %42 = tpu.matmul %37, %7, %cst_16 {dimension_numbers = #tpu.dot_dimension_numbers<[1], [0], [0], [1], [0, 0, 1, 1], [], []>} : vector<8x32xf32>, vector<32x128xf32>, vector<8x128xf32> -> vector<8x128xf32>
    %43 = arith.addf %41, %42 : vector<8x128xf32>
    %44 = math.tanh %43 : vector<8x128xf32>
    %45 = arith.negf %43 : vector<8x128xf32>
    %46 = math.exp %45 : vector<8x128xf32>
    %cst_17 = arith.constant 1.000000e+00 : f32
    %47 = vector.broadcast %cst_17 : f32 to vector<8x128xf32>
    %48 = arith.addf %47, %46 : vector<8x128xf32>
    %49 = arith.divf %47, %48 : vector<8x128xf32>
    %50 = arith.select %13, %44, %49 : vector<8x128xi1>, vector<8x128xf32>
    %51 = vector.extract_strided_slice %50 {offsets = [0, 0], sizes = [8, 32], strides = [1, 1]} : vector<8x128xf32> to vector<8x32xf32>
    %52 = vector.extract_strided_slice %50 {offsets = [0, 32], sizes = [8, 32], strides = [1, 1]} : vector<8x128xf32> to vector<8x32xf32>
    %53 = vector.extract_strided_slice %50 {offsets = [0, 64], sizes = [8, 32], strides = [1, 1]} : vector<8x128xf32> to vector<8x32xf32>
    %54 = vector.extract_strided_slice %50 {offsets = [0, 96], sizes = [8, 32], strides = [1, 1]} : vector<8x128xf32> to vector<8x32xf32>
    %55 = arith.mulf %52, %35 : vector<8x32xf32>
    %56 = arith.mulf %51, %53 : vector<8x32xf32>
    %57 = arith.addf %55, %56 : vector<8x32xf32>
    %58 = math.tanh %57 : vector<8x32xf32>
    %59 = arith.mulf %54, %58 : vector<8x32xf32>
    %c2_i32 = arith.constant 2 : i32
    %c8_i32_18 = arith.constant 8 : i32
    %60 = arith.muli %c2_i32, %c8_i32_18 : i32
    %61 = tpu.assume_multiple %60, 8 : i32
    %62 = arith.index_cast %61 : i32 to index
    %c0_19 = arith.constant 0 : index
    %63 = vector.load %arg7[%62, %c0_19] : memref<64x128xf32, #tpu.memory_space<vmem>>, vector<8x128xf32>
    %cst_20 = arith.constant dense<0.000000e+00> : vector<8x128xf32>
    %64 = tpu.matmul %59, %7, %cst_20 {dimension_numbers = #tpu.dot_dimension_numbers<[1], [0], [0], [1], [0, 0, 1, 1], [], []>} : vector<8x32xf32>, vector<32x128xf32>, vector<8x128xf32> -> vector<8x128xf32>
    %65 = arith.addf %63, %64 : vector<8x128xf32>
    %66 = math.tanh %65 : vector<8x128xf32>
    %67 = arith.negf %65 : vector<8x128xf32>
    %68 = math.exp %67 : vector<8x128xf32>
    %cst_21 = arith.constant 1.000000e+00 : f32
    %69 = vector.broadcast %cst_21 : f32 to vector<8x128xf32>
    %70 = arith.addf %69, %68 : vector<8x128xf32>
    %71 = arith.divf %69, %70 : vector<8x128xf32>
    %72 = arith.select %13, %66, %71 : vector<8x128xi1>, vector<8x128xf32>
    %73 = vector.extract_strided_slice %72 {offsets = [0, 0], sizes = [8, 32], strides = [1, 1]} : vector<8x128xf32> to vector<8x32xf32>
    %74 = vector.extract_strided_slice %72 {offsets = [0, 32], sizes = [8, 32], strides = [1, 1]} : vector<8x128xf32> to vector<8x32xf32>
    %75 = vector.extract_strided_slice %72 {offsets = [0, 64], sizes = [8, 32], strides = [1, 1]} : vector<8x128xf32> to vector<8x32xf32>
    %76 = vector.extract_strided_slice %72 {offsets = [0, 96], sizes = [8, 32], strides = [1, 1]} : vector<8x128xf32> to vector<8x32xf32>
    %77 = arith.mulf %74, %57 : vector<8x32xf32>
    %78 = arith.mulf %73, %75 : vector<8x32xf32>
    %79 = arith.addf %77, %78 : vector<8x32xf32>
    %80 = math.tanh %79 : vector<8x32xf32>
    %81 = arith.mulf %76, %80 : vector<8x32xf32>
    %c3_i32 = arith.constant 3 : i32
    %c8_i32_22 = arith.constant 8 : i32
    %82 = arith.muli %c3_i32, %c8_i32_22 : i32
    %83 = tpu.assume_multiple %82, 8 : i32
    %84 = arith.index_cast %83 : i32 to index
    %c0_23 = arith.constant 0 : index
    %85 = vector.load %arg7[%84, %c0_23] : memref<64x128xf32, #tpu.memory_space<vmem>>, vector<8x128xf32>
    %cst_24 = arith.constant dense<0.000000e+00> : vector<8x128xf32>
    %86 = tpu.matmul %81, %7, %cst_24 {dimension_numbers = #tpu.dot_dimension_numbers<[1], [0], [0], [1], [0, 0, 1, 1], [], []>} : vector<8x32xf32>, vector<32x128xf32>, vector<8x128xf32> -> vector<8x128xf32>
    %87 = arith.addf %85, %86 : vector<8x128xf32>
    %88 = math.tanh %87 : vector<8x128xf32>
    %89 = arith.negf %87 : vector<8x128xf32>
    %90 = math.exp %89 : vector<8x128xf32>
    %cst_25 = arith.constant 1.000000e+00 : f32
    %91 = vector.broadcast %cst_25 : f32 to vector<8x128xf32>
    %92 = arith.addf %91, %90 : vector<8x128xf32>
    %93 = arith.divf %91, %92 : vector<8x128xf32>
    %94 = arith.select %13, %88, %93 : vector<8x128xi1>, vector<8x128xf32>
    %95 = vector.extract_strided_slice %94 {offsets = [0, 0], sizes = [8, 32], strides = [1, 1]} : vector<8x128xf32> to vector<8x32xf32>
    %96 = vector.extract_strided_slice %94 {offsets = [0, 32], sizes = [8, 32], strides = [1, 1]} : vector<8x128xf32> to vector<8x32xf32>
    %97 = vector.extract_strided_slice %94 {offsets = [0, 64], sizes = [8, 32], strides = [1, 1]} : vector<8x128xf32> to vector<8x32xf32>
    %98 = vector.extract_strided_slice %94 {offsets = [0, 96], sizes = [8, 32], strides = [1, 1]} : vector<8x128xf32> to vector<8x32xf32>
    %99 = arith.mulf %96, %79 : vector<8x32xf32>
    %100 = arith.mulf %95, %97 : vector<8x32xf32>
    %101 = arith.addf %99, %100 : vector<8x32xf32>
    %102 = math.tanh %101 : vector<8x32xf32>
    %103 = arith.mulf %98, %102 : vector<8x32xf32>
    %c4_i32 = arith.constant 4 : i32
    %c8_i32_26 = arith.constant 8 : i32
    %104 = arith.muli %c4_i32, %c8_i32_26 : i32
    %105 = tpu.assume_multiple %104, 8 : i32
    %106 = arith.index_cast %105 : i32 to index
    %c0_27 = arith.constant 0 : index
    %107 = vector.load %arg7[%106, %c0_27] : memref<64x128xf32, #tpu.memory_space<vmem>>, vector<8x128xf32>
    %cst_28 = arith.constant dense<0.000000e+00> : vector<8x128xf32>
    %108 = tpu.matmul %103, %7, %cst_28 {dimension_numbers = #tpu.dot_dimension_numbers<[1], [0], [0], [1], [0, 0, 1, 1], [], []>} : vector<8x32xf32>, vector<32x128xf32>, vector<8x128xf32> -> vector<8x128xf32>
    %109 = arith.addf %107, %108 : vector<8x128xf32>
    %110 = math.tanh %109 : vector<8x128xf32>
    %111 = arith.negf %109 : vector<8x128xf32>
    %112 = math.exp %111 : vector<8x128xf32>
    %cst_29 = arith.constant 1.000000e+00 : f32
    %113 = vector.broadcast %cst_29 : f32 to vector<8x128xf32>
    %114 = arith.addf %113, %112 : vector<8x128xf32>
    %115 = arith.divf %113, %114 : vector<8x128xf32>
    %116 = arith.select %13, %110, %115 : vector<8x128xi1>, vector<8x128xf32>
    %117 = vector.extract_strided_slice %116 {offsets = [0, 0], sizes = [8, 32], strides = [1, 1]} : vector<8x128xf32> to vector<8x32xf32>
    %118 = vector.extract_strided_slice %116 {offsets = [0, 32], sizes = [8, 32], strides = [1, 1]} : vector<8x128xf32> to vector<8x32xf32>
    %119 = vector.extract_strided_slice %116 {offsets = [0, 64], sizes = [8, 32], strides = [1, 1]} : vector<8x128xf32> to vector<8x32xf32>
    %120 = vector.extract_strided_slice %116 {offsets = [0, 96], sizes = [8, 32], strides = [1, 1]} : vector<8x128xf32> to vector<8x32xf32>
    %121 = arith.mulf %118, %101 : vector<8x32xf32>
    %122 = arith.mulf %117, %119 : vector<8x32xf32>
    %123 = arith.addf %121, %122 : vector<8x32xf32>
    %124 = math.tanh %123 : vector<8x32xf32>
    %125 = arith.mulf %120, %124 : vector<8x32xf32>
    %c5_i32 = arith.constant 5 : i32
    %c8_i32_30 = arith.constant 8 : i32
    %126 = arith.muli %c5_i32, %c8_i32_30 : i32
    %127 = tpu.assume_multiple %126, 8 : i32
    %128 = arith.index_cast %127 : i32 to index
    %c0_31 = arith.constant 0 : index
    %129 = vector.load %arg7[%128, %c0_31] : memref<64x128xf32, #tpu.memory_space<vmem>>, vector<8x128xf32>
    %cst_32 = arith.constant dense<0.000000e+00> : vector<8x128xf32>
    %130 = tpu.matmul %125, %7, %cst_32 {dimension_numbers = #tpu.dot_dimension_numbers<[1], [0], [0], [1], [0, 0, 1, 1], [], []>} : vector<8x32xf32>, vector<32x128xf32>, vector<8x128xf32> -> vector<8x128xf32>
    %131 = arith.addf %129, %130 : vector<8x128xf32>
    %132 = math.tanh %131 : vector<8x128xf32>
    %133 = arith.negf %131 : vector<8x128xf32>
    %134 = math.exp %133 : vector<8x128xf32>
    %cst_33 = arith.constant 1.000000e+00 : f32
    %135 = vector.broadcast %cst_33 : f32 to vector<8x128xf32>
    %136 = arith.addf %135, %134 : vector<8x128xf32>
    %137 = arith.divf %135, %136 : vector<8x128xf32>
    %138 = arith.select %13, %132, %137 : vector<8x128xi1>, vector<8x128xf32>
    %139 = vector.extract_strided_slice %138 {offsets = [0, 0], sizes = [8, 32], strides = [1, 1]} : vector<8x128xf32> to vector<8x32xf32>
    %140 = vector.extract_strided_slice %138 {offsets = [0, 32], sizes = [8, 32], strides = [1, 1]} : vector<8x128xf32> to vector<8x32xf32>
    %141 = vector.extract_strided_slice %138 {offsets = [0, 64], sizes = [8, 32], strides = [1, 1]} : vector<8x128xf32> to vector<8x32xf32>
    %142 = vector.extract_strided_slice %138 {offsets = [0, 96], sizes = [8, 32], strides = [1, 1]} : vector<8x128xf32> to vector<8x32xf32>
    %143 = arith.mulf %140, %123 : vector<8x32xf32>
    %144 = arith.mulf %139, %141 : vector<8x32xf32>
    %145 = arith.addf %143, %144 : vector<8x32xf32>
    %146 = math.tanh %145 : vector<8x32xf32>
    %147 = arith.mulf %142, %146 : vector<8x32xf32>
    %c6_i32 = arith.constant 6 : i32
    %c8_i32_34 = arith.constant 8 : i32
    %148 = arith.muli %c6_i32, %c8_i32_34 : i32
    %149 = tpu.assume_multiple %148, 8 : i32
    %150 = arith.index_cast %149 : i32 to index
    %c0_35 = arith.constant 0 : index
    %151 = vector.load %arg7[%150, %c0_35] : memref<64x128xf32, #tpu.memory_space<vmem>>, vector<8x128xf32>
    %cst_36 = arith.constant dense<0.000000e+00> : vector<8x128xf32>
    %152 = tpu.matmul %147, %7, %cst_36 {dimension_numbers = #tpu.dot_dimension_numbers<[1], [0], [0], [1], [0, 0, 1, 1], [], []>} : vector<8x32xf32>, vector<32x128xf32>, vector<8x128xf32> -> vector<8x128xf32>
    %153 = arith.addf %151, %152 : vector<8x128xf32>
    %154 = math.tanh %153 : vector<8x128xf32>
    %155 = arith.negf %153 : vector<8x128xf32>
    %156 = math.exp %155 : vector<8x128xf32>
    %cst_37 = arith.constant 1.000000e+00 : f32
    %157 = vector.broadcast %cst_37 : f32 to vector<8x128xf32>
    %158 = arith.addf %157, %156 : vector<8x128xf32>
    %159 = arith.divf %157, %158 : vector<8x128xf32>
    %160 = arith.select %13, %154, %159 : vector<8x128xi1>, vector<8x128xf32>
    %161 = vector.extract_strided_slice %160 {offsets = [0, 0], sizes = [8, 32], strides = [1, 1]} : vector<8x128xf32> to vector<8x32xf32>
    %162 = vector.extract_strided_slice %160 {offsets = [0, 32], sizes = [8, 32], strides = [1, 1]} : vector<8x128xf32> to vector<8x32xf32>
    %163 = vector.extract_strided_slice %160 {offsets = [0, 64], sizes = [8, 32], strides = [1, 1]} : vector<8x128xf32> to vector<8x32xf32>
    %164 = vector.extract_strided_slice %160 {offsets = [0, 96], sizes = [8, 32], strides = [1, 1]} : vector<8x128xf32> to vector<8x32xf32>
    %165 = arith.mulf %162, %145 : vector<8x32xf32>
    %166 = arith.mulf %161, %163 : vector<8x32xf32>
    %167 = arith.addf %165, %166 : vector<8x32xf32>
    %168 = math.tanh %167 : vector<8x32xf32>
    %169 = arith.mulf %164, %168 : vector<8x32xf32>
    %c7_i32 = arith.constant 7 : i32
    %c8_i32_38 = arith.constant 8 : i32
    %170 = arith.muli %c7_i32, %c8_i32_38 : i32
    %171 = tpu.assume_multiple %170, 8 : i32
    %172 = arith.index_cast %171 : i32 to index
    %c0_39 = arith.constant 0 : index
    %173 = vector.load %arg7[%172, %c0_39] : memref<64x128xf32, #tpu.memory_space<vmem>>, vector<8x128xf32>
    %cst_40 = arith.constant dense<0.000000e+00> : vector<8x128xf32>
    %174 = tpu.matmul %169, %7, %cst_40 {dimension_numbers = #tpu.dot_dimension_numbers<[1], [0], [0], [1], [0, 0, 1, 1], [], []>} : vector<8x32xf32>, vector<32x128xf32>, vector<8x128xf32> -> vector<8x128xf32>
    %175 = arith.addf %173, %174 : vector<8x128xf32>
    %176 = math.tanh %175 : vector<8x128xf32>
    %177 = arith.negf %175 : vector<8x128xf32>
    %178 = math.exp %177 : vector<8x128xf32>
    %cst_41 = arith.constant 1.000000e+00 : f32
    %179 = vector.broadcast %cst_41 : f32 to vector<8x128xf32>
    %180 = arith.addf %179, %178 : vector<8x128xf32>
    %181 = arith.divf %179, %180 : vector<8x128xf32>
    %182 = arith.select %13, %176, %181 : vector<8x128xi1>, vector<8x128xf32>
    %183 = vector.extract_strided_slice %182 {offsets = [0, 0], sizes = [8, 32], strides = [1, 1]} : vector<8x128xf32> to vector<8x32xf32>
    %184 = vector.extract_strided_slice %182 {offsets = [0, 32], sizes = [8, 32], strides = [1, 1]} : vector<8x128xf32> to vector<8x32xf32>
    %185 = vector.extract_strided_slice %182 {offsets = [0, 64], sizes = [8, 32], strides = [1, 1]} : vector<8x128xf32> to vector<8x32xf32>
    %186 = vector.extract_strided_slice %182 {offsets = [0, 96], sizes = [8, 32], strides = [1, 1]} : vector<8x128xf32> to vector<8x32xf32>
    %187 = arith.mulf %184, %167 : vector<8x32xf32>
    %188 = arith.mulf %183, %185 : vector<8x32xf32>
    %189 = arith.addf %187, %188 : vector<8x32xf32>
    %190 = math.tanh %189 : vector<8x32xf32>
    %191 = arith.mulf %186, %190 : vector<8x32xf32>
    %c8_i32_42 = arith.constant 8 : i32
    %c0_43 = arith.constant 0 : index
    %c0_44 = arith.constant 0 : index
    %192 = vector.load %arg4[%c0_43, %c0_44] : memref<32x128xf32, #tpu.memory_space<vmem>>, vector<32x128xf32>
    %cst_45 = arith.constant dense<0.000000e+00> : vector<8x128xf32>
    %193 = tpu.matmul %191, %192, %cst_45 {dimension_numbers = #tpu.dot_dimension_numbers<[1], [0], [0], [1], [0, 0, 1, 1], [], []>} : vector<8x32xf32>, vector<32x128xf32>, vector<8x128xf32> -> vector<8x128xf32>
    %c0_46 = arith.constant 0 : index
    %c0_47 = arith.constant 0 : index
    %194 = vector.load %arg5[%c0_46, %c0_47] : memref<1x128xf32, #tpu.memory_space<vmem>>, vector<1x128xf32>
    %195 = vector.broadcast %194 : vector<1x128xf32> to vector<8x128xf32>
    %196 = arith.addf %193, %195 : vector<8x128xf32>
    %c0_48 = arith.constant 0 : index
    %c0_49 = arith.constant 0 : index
    %197 = vector.load %arg6[%c0_48, %c0_49] : memref<8x128xf32, #tpu.memory_space<vmem>>, vector<8x128xf32>
    tpu.vector_store %arg6[%c0_48, %c0_49], %196 {strides = array<i32>} : memref<8x128xf32, #tpu.memory_space<vmem>>, vector<8x128xf32>,
    return
  }
}

</mosaic_0001>

<bundles_post_ra>
// kernel: tpu_custom_call.1
= control target key start
LH: loop header
LB: loop body
LE: loop exit
PB: predicated region body
PF: predicated region fallthrough
CT: control target
= control target key end

     0   :  { %vm38_vm0 = vcmask 130048   ;;  %s1050_s0 = inlined_call_operand.vmem [shape: f32[64,16], index: 0, kind: input, shape index: {}]   ;;  %s1051_s1 = inlined_call_operand.vmem [shape: f32[16,128], index: 1, kind: input, shape index: {}]   ;;  %s1052_s2 = inlined_call_operand.vmem [shape: f32[32,128], index: 2, kind: input, shape index: {}]   ;;  %s1053_s3 = inlined_call_operand.vmem [shape: f32[1,128], index: 3, kind: input, shape index: {}]   ;;  %s1054_s4 = inlined_call_operand.vmem [shape: f32[32,128], index: 4, kind: input, shape index: {}]   ;;  %s1055_s5 = inlined_call_operand.vmem [shape: f32[1,128], index: 5, kind: input, shape index: {}]   ;;  %s1056_s6 = inlined_call_operand.hbm [shape: f32[8,128], index: 6, kind: output, shape index: {}]  }
   0x1   :  { %v33_v0 = vld [vmem:[%s1051_s1 + $0x8] sm:$0xff]  ;;  %v32_v1 = vld [vmem:[%s1051_s1] sm:$0xff]  ;;  %v872_v3 = vld [vmem:[%s1052_s2 + $0x18] sm:$0xff] }
   0x2   :  { %721 = vmatpush.msra.mxu1 %v33_v0  ;;  %v29_v2 = vld [vmem:[%s1050_s0 + $0x28] sm:$0xff]  ;;  %77 = vmatpush.msra.mxu0 %v33_v0  ;;  %v24_v4 = vld [vmem:[%s1050_s0] sm:$0xff] }
   0x3   :  { %722 = vmatpush.msra.mxu2 %v33_v0  ;;  %270 = vmatpush.msra.mxu3 %v872_v3 }
   0x4   :  { %723 = vmatpush.msra.mxu1 %v32_v1  ;;  %78 = vmatpush.msra.mxu0 %v32_v1 }
   0x5   :  { %11 = vsyncpa [#allocation4], 0  ;;  %702 = vmatmul.msk.f32.vlgmr.msra.gmra.mxu1 %vm38_vm0, %v29_v2  ;;  %v882_v5 = vld [vmem:[%s1052_s2 + $0x10] sm:$0xff]  ;;  %697 = vmatmul.msk.f32.vlgmr.msra.gmra.mxu0 %vm38_vm0, %v24_v4  ;;  %v889_v6 = vld [vmem:[%s1052_s2 + $0x8] sm:$0xff]  ;;  %v821_v8 = vmov 0.0   ;;  %v116_v18 = vlaneseq  ;;  %s823_s13 = smov 32  }
   0x6   :  { %138 = vmatpush.msrb.mxu1 %v872_v3  ;;  %724 = vmatpush.msra.mxu2 %v32_v1  ;;  %v897_v7 = vld [vmem:[%s1052_s2] sm:$0xff]  ;;  %v30_v39 = vld [vmem:[%s1050_s0 + $0x30] sm:$0xff]  ;;  %v31_v40 = vld [vmem:[%s1050_s0 + $0x38] sm:$0xff]  ;;  %vm122_vm8 = vcmask 261120   ;;  %s824_s10 = smov [#allocation3]  }
   0x7   :  { %271 = vmatpush.msra.mxu3 %v882_v5  ;;  %v923_v11 = vld [vmem:[%s1053_s3] ss:$0 sm:$0xff]  ;;  %v117_v20 = vand.u32 127, %v116_v18  ;;  %s822_s3 = smov 64   ;;  %703 = vmatmul.msk.f32.vlgmr.msra.gmra.mxu2 %vm38_vm0, %v30_v39  ;;  %v25_v43 = vld [vmem:[%s1050_s0 + $0x8] sm:$0xff]  ;;  %v649_v26 = vld [vmem:[%s1054_s4 + $0x10] sm:$0xff] }
   0x8   :  { %204 = vmatpush.msrb.mxu2 %v872_v3  ;;  %139 = vmatpush.msrb.mxu1 %v882_v5  ;;  %s686_s11 = sshll.u32 %s824_s10, 4  ;;  %s687_s11 = int_to_ptr.vmem [resolvable:$true] %s686_s11 }
   0x9   :  { %272 = vmatpush.msra.mxu3 %v889_v6  ;;  %vm118_vm1 = vcmp.ge.s32.totalorder %v117_v20, 64  ;;  %vm119_vm2 = vcmp.lt.s32.totalorder %v117_v20, 96 }
   0xa   :  { %205 = vmatpush.msrb.mxu2 %v882_v5  ;;  %140 = vmatpush.msrb.mxu1 %v889_v6  ;;  %vm926_vm4 = vmand %vm118_vm1, %vm119_vm2 }
   0xb   :  { %273 = vmatpush.msra.mxu3 %v897_v7 }
   0xc   :  { %206 = vmatpush.msrb.mxu2 %v889_v6  ;;  %141 = vmatpush.msrb.mxu1 %v897_v7 }
   0xd   :  { %468 = vmatpush.msrb.mxu3 %v872_v3  ;;  %142 = vmatmul.f32.vlgmr.msrb.gmra.mxu1 %v821_v8 }
   0xe   :  { %207 = vmatpush.msrb.mxu2 %v897_v7  ;;  %336 = vmatpush.msra.mxu1 %v872_v3 }
   0xf   :  { %469 = vmatpush.msrb.mxu3 %v882_v5  ;;  %704 = vmatmul.msk.f32.gmra.mxu2 %vm38_vm0, %v31_v40  ;;  %v27_v40 = vld [vmem:[%s1050_s0 + $0x18] sm:$0xff] }
  0x10   :  { %337 = vmatpush.msra.mxu1 %v882_v5  ;;  %402 = vmatpush.msra.mxu2 %v872_v3 }
  0x11   :  { %470 = vmatpush.msrb.mxu3 %v889_v6  ;;  %698 = vmatmul.msk.f32.gmra.mxu0 %vm38_vm0, %v25_v43 }
  0x12   :  { %338 = vmatpush.msra.mxu1 %v889_v6  ;;  %403 = vmatpush.msra.mxu2 %v882_v5 }
  0x13   :  { %471 = vmatpush.msrb.mxu3 %v897_v7 }
  0x14   :  { %339 = vmatpush.msra.mxu1 %v897_v7  ;;  %404 = vmatpush.msra.mxu2 %v889_v6 }
  0x16   :  { %534 = vmatpush.msrb.mxu1 %v872_v3  ;;  %405 = vmatpush.msra.mxu2 %v897_v7 }
  0x18   :  { %535 = vmatpush.msrb.mxu1 %v882_v5 }
  0x1a   :  { %536 = vmatpush.msrb.mxu1 %v889_v6 }
  0x1c   :  { %537 = vmatpush.msrb.mxu1 %v897_v7 }
  0x82   :  { %v918_v9 = vpop.f32.mrf.mxu1  ;;  %v80_v10 = vpop.f32.mrf.mxu0 }
  0x83   :  { %v81_v12 = vadd.f32 %v923_v11, %v80_v10 }
  0x8a   :  { %v143_v13 = vpop.f32.mrf.mxu1  ;;  %v957_v45 = vpop.f32.mrf.mxu2 }
  0x8b   :  { %v146_v14 = vadd.f32 %v143_v13, %v81_v12  ;;  %v26_v12 = vld [vmem:[%s1050_s0 + $0x10] sm:$0xff] }
  0x8c   :  { %699 = vmatmul.msk.f32.gmra.mxu0 %vm38_vm0, %v26_v12 }
  0x8d   :  { %v705_v15 = vmul.f32 -1.442695, %v146_v14 }
  0x8e   :  { %v83_v47 = vpop.f32.mrf.mxu0 }
  0x8f   :  { %731 = vpow2.f32 %v705_v15  ;;  %v84_v48 = vadd.f32 %v923_v11, %v83_v47 }
  0x92   :  { %v959_v46 = vpop.f32.mrf.mxu2 }
  0x94   :  { %700 = vmatmul.msk.f32.gmra.mxu0 %vm38_vm0, %v27_v40 }
  0x95   :  { %v732_v16 = vpop.eup %731 }
  0x96   :  { %v151_v17 = vadd.f32 1.0, %v732_v16 }
  0x98   :  { %733 = vrcp.f32 %v151_v17  ;;  %v163_v23 = vand.u32 2147483648, %v151_v17  ;;  %v161_v25 = vand.u32 2147483647, %v151_v17  ;;  %vm157_vm5 = vweird.f32 %v151_v17 }
  0x99   :  { %735 = vtanh.f32 %v146_v14 }
  0x9a   :  { %v164_v28 = vor.u32 1.1754944e-38, %v163_v23  ;;  %vm162_vm7 = vcmp.eq.f32.partialorder %v161_v25, 8.507059e+37 }
  0x9e   :  { %v734_v19 = vpop.eup %733 }
  0x9f   :  { %v153_v21 = vmul.f32 %v734_v19, %v151_v17  ;;  %vm158_vm3 = vweird.f32 %v734_v19  ;;  %v736_v30 = vpop.eup %735 }
  0xa0   :  { %vm159_vm6 = vmor %vm157_vm5, %vm158_vm3 }
  0xa1   :  { %v154_v22 = vsub.f32 1.0, %v153_v21 }
  0xa3   :  { %v155_v24 = vmul.f32 %v734_v19, %v154_v22 }
  0xa5   :  { %v156_v27 = vadd.f32 %v734_v19, %v155_v24 }
  0xa7   :  { %v160_v29 = vsel %vm159_vm6, %v734_v19, %v156_v27 }
  0xa8   :  { %v165_v31 = vsel %vm162_vm7, %v164_v28, %v160_v29 }
  0xa9   :  { %v167_v32 = vsel %vm926_vm4, %v736_v30, %v165_v31 }
  0xaa   :  { %170 = vrot.lane.b32.xlu0 %v167_v32, %s822_s3  ;;  %v168_v35 = vmul.f32 0.0, %v167_v32 }
 0x109   :  { %v86_v14 = vpop.f32.mrf.mxu0 }
 0x10a   :  { %v87_v15 = vadd.f32 %v923_v11, %v86_v14 }
 0x11c   :  { %v171_v33 = vpop.permute.xlu0 %170 }
 0x11d   :  { %v173_v34 = vmul.f32 %v171_v33, %v167_v32 }
 0x11f   :  { %175 = vrot.lane.b32.xlu0 %v173_v34, %s823_s13 }
 0x191   :  { %v176_v36 = vpop.permute.xlu0 %175 }
 0x192   :  { %v178_v37 = vadd.f32 %v176_v36, %v168_v35 }
 0x194   :  { %737 = vtanh.f32 %v178_v37 }
 0x19a   :  { %v738_v38 = vpop.eup %737 }
 0x19b   :  { %181 = vrot.lane.b32.xlu1 %v738_v38, %s822_s3 }
 0x20d   :  { %v182_v41 = vpop.permute.xlu1 %181 }
 0x20e   :  { %v184_v42 = vmul.f32 %v182_v41, %v167_v32 }
 0x210   :  { %188 = vrot.lane.b32.xlu1 %v184_v42, %s823_s13 }
 0x282   :  { %v189_v44 = vpop.permute.xlu1 %188 }
 0x283   :  { %706 = vmatmul.msk.f32.vlgmr.msrb.gmra.mxu2 %vm122_vm8, %v189_v44  ;;  %v89_v44 = vpop.f32.mrf.mxu0 }
 0x284   :  { %600 = vmatpush.msrb.mxu2 %v872_v3  ;;  %v90_v47 = vadd.f32 %v923_v11, %v89_v44 }
 0x286   :  { %601 = vmatpush.msrb.mxu2 %v882_v5 }
 0x288   :  { %602 = vmatpush.msrb.mxu2 %v889_v6 }
 0x28a   :  { %603 = vmatpush.msrb.mxu2 %v897_v7 }
 0x306   :  { %v209_v49 = vpop.f32.mrf.mxu2 }
 0x307   :  { %v212_v50 = vadd.f32 %v209_v49, %v84_v48 }
 0x309   :  { %v707_v51 = vmul.f32 -1.442695, %v212_v50 }
 0x30b   :  { %739 = vpow2.f32 %v707_v51 }
 0x311   :  { %v740_v52 = vpop.eup %739 }
 0x312   :  { %v217_v53 = vadd.f32 1.0, %v740_v52 }
 0x314   :  { %741 = vrcp.f32 %v217_v53  ;;  %v229_v57 = vand.u32 2147483648, %v217_v53  ;;  %v227_v59 = vand.u32 2147483647, %v217_v53  ;;  %vm223_vm10 = vweird.f32 %v217_v53 }
 0x315   :  { %743 = vtanh.f32 %v212_v50 }
 0x316   :  { %v230_v61 = vor.u32 1.1754944e-38, %v229_v57  ;;  %vm228_vm12 = vcmp.eq.f32.partialorder %v227_v59, 8.507059e+37 }
 0x31a   :  { %v742_v54 = vpop.eup %741 }
 0x31b   :  { %v219_v55 = vmul.f32 %v742_v54, %v217_v53  ;;  %vm224_vm9 = vweird.f32 %v742_v54  ;;  %v744_v63 = vpop.eup %743 }
 0x31c   :  { %vm225_vm11 = vmor %vm223_vm10, %vm224_vm9 }
 0x31d   :  { %v220_v56 = vsub.f32 1.0, %v219_v55 }
 0x31f   :  { %v221_v58 = vmul.f32 %v742_v54, %v220_v56 }
 0x321   :  { %v222_v60 = vadd.f32 %v742_v54, %v221_v58 }
 0x323   :  { %v226_v62 = vsel %vm225_vm11, %v742_v54, %v222_v60 }
 0x324   :  { %v231_v0 = vsel %vm228_vm12, %v230_v61, %v226_v62 }
 0x325   :  { %v233_v1 = vsel %vm926_vm4, %v744_v63, %v231_v0 }
 0x326   :  { %236 = vrot.lane.b32.xlu2 %v233_v1, %s822_s3  ;;  %v234_v4 = vmul.f32 %v233_v1, %v178_v37 }
 0x380   :  { %v237_v2 = vpop.permute.xlu2 %236 }
 0x381   :  { %v239_v3 = vmul.f32 %v237_v2, %v233_v1 }
 0x383   :  { %241 = vrot.lane.b32.xlu2 %v239_v3, %s823_s13 }
 0x3dd   :  { %v242_v5 = vpop.permute.xlu2 %241 }
 0x3de   :  { %v244_v6 = vadd.f32 %v242_v5, %v234_v4 }
 0x3e0   :  { %745 = vtanh.f32 %v244_v6 }
 0x3e6   :  { %v746_v7 = vpop.eup %745 }
 0x3e7   :  { %247 = vrot.lane.b32.xlu0 %v746_v7, %s822_s3 }
 0x459   :  { %v248_v8 = vpop.permute.xlu0 %247 }
 0x45a   :  { %v250_v10 = vmul.f32 %v248_v8, %v233_v1 }
 0x45c   :  { %254 = vrot.lane.b32.xlu1 %v250_v10, %s823_s13  ;;  %v28_v10 = vld [vmem:[%s1050_s0 + $0x20] sm:$0xff] }
 0x45d   :  { %701 = vmatmul.msk.f32.gmra.mxu0 %vm38_vm0, %v28_v10 }
 0x4ce   :  { %v255_v13 = vpop.permute.xlu1 %254 }
 0x4cf   :  { %708 = vmatmul.msk.f32.vlgmr.msra.gmra.mxu3 %vm122_vm8, %v255_v13 }
 0x4da   :  { %v92_v13 = vpop.f32.mrf.mxu0 }
 0x4db   :  { %v93_v14 = vadd.f32 %v923_v11, %v92_v13 }
 0x552   :  { %v275_v16 = vpop.f32.mrf.mxu3 }
 0x553   :  { %v278_v17 = vadd.f32 %v275_v16, %v87_v15 }
 0x555   :  { %v709_v18 = vmul.f32 -1.442695, %v278_v17 }
 0x557   :  { %747 = vpow2.f32 %v709_v18 }
 0x55d   :  { %v748_v19 = vpop.eup %747 }
 0x55e   :  { %v283_v20 = vadd.f32 1.0, %v748_v19 }
 0x560   :  { %749 = vrcp.f32 %v283_v20  ;;  %v295_v24 = vand.u32 2147483648, %v283_v20  ;;  %v293_v27 = vand.u32 2147483647, %v283_v20  ;;  %vm289_vm14 = vweird.f32 %v283_v20 }
 0x561   :  { %751 = vtanh.f32 %v278_v17 }
 0x562   :  { %v296_v29 = vor.u32 1.1754944e-38, %v295_v24  ;;  %vm294_vm1 = vcmp.eq.f32.partialorder %v293_v27, 8.507059e+37 }
 0x566   :  { %v750_v21 = vpop.eup %749 }
 0x567   :  { %v285_v22 = vmul.f32 %v750_v21, %v283_v20  ;;  %vm290_vm13 = vweird.f32 %v750_v21  ;;  %v752_v31 = vpop.eup %751 }
 0x568   :  { %vm291_vm15 = vmor %vm289_vm14, %vm290_vm13 }
 0x569   :  { %v286_v23 = vsub.f32 1.0, %v285_v22 }
 0x56b   :  { %v287_v25 = vmul.f32 %v750_v21, %v286_v23 }
 0x56d   :  { %v288_v28 = vadd.f32 %v750_v21, %v287_v25 }
 0x56f   :  { %v292_v30 = vsel %vm291_vm15, %v750_v21, %v288_v28 }
 0x570   :  { %v297_v32 = vsel %vm294_vm1, %v296_v29, %v292_v30 }
 0x571   :  { %v299_v33 = vsel %vm926_vm4, %v752_v31, %v297_v32 }
 0x572   :  { %302 = vrot.lane.b32.xlu2 %v299_v33, %s822_s3  ;;  %v300_v36 = vmul.f32 %v299_v33, %v244_v6 }
 0x5cc   :  { %v303_v34 = vpop.permute.xlu2 %302 }
 0x5cd   :  { %v305_v35 = vmul.f32 %v303_v34, %v299_v33 }
 0x5cf   :  { %307 = vrot.lane.b32.xlu0 %v305_v35, %s823_s13 }
 0x641   :  { %v308_v37 = vpop.permute.xlu0 %307 }
 0x642   :  { %v310_v38 = vadd.f32 %v308_v37, %v300_v36 }
 0x644   :  { %753 = vtanh.f32 %v310_v38 }
 0x64a   :  { %v754_v39 = vpop.eup %753 }
 0x64b   :  { %313 = vrot.lane.b32.xlu1 %v754_v39, %s822_s3 }
 0x6bd   :  { %v314_v41 = vpop.permute.xlu1 %313 }
 0x6be   :  { %v316_v42 = vmul.f32 %v314_v41, %v299_v33 }
 0x6c0   :  { %320 = vrot.lane.b32.xlu2 %v316_v42, %s823_s13  ;;  %v96_v42 = vadd.f32 %v923_v11, %v918_v9 }
 0x71a   :  { %v321_v43 = vpop.permute.xlu2 %320 }
 0x71b   :  { %710 = vmatmul.msk.f32.vlgmr.msra.gmra.mxu1 %vm122_vm8, %v321_v43 }
 0x798   :  { %v341_v48 = vpop.f32.mrf.mxu1 }
 0x799   :  { %v344_v49 = vadd.f32 %v341_v48, %v90_v47 }
 0x79b   :  { %v711_v50 = vmul.f32 -1.442695, %v344_v49 }
 0x79d   :  { %755 = vpow2.f32 %v711_v50 }
 0x7a3   :  { %v756_v51 = vpop.eup %755 }
 0x7a4   :  { %v349_v52 = vadd.f32 1.0, %v756_v51 }
 0x7a6   :  { %757 = vrcp.f32 %v349_v52  ;;  %v361_v56 = vand.u32 2147483648, %v349_v52  ;;  %v359_v58 = vand.u32 2147483647, %v349_v52  ;;  %vm355_vm3 = vweird.f32 %v349_v52 }
 0x7a7   :  { %759 = vtanh.f32 %v344_v49 }
 0x7a8   :  { %v362_v60 = vor.u32 1.1754944e-38, %v361_v56  ;;  %vm360_vm6 = vcmp.eq.f32.partialorder %v359_v58, 8.507059e+37 }
 0x7ac   :  { %v758_v53 = vpop.eup %757 }
 0x7ad   :  { %v351_v54 = vmul.f32 %v758_v53, %v349_v52  ;;  %vm356_vm2 = vweird.f32 %v758_v53  ;;  %v760_v62 = vpop.eup %759 }
 0x7ae   :  { %vm357_vm5 = vmor %vm355_vm3, %vm356_vm2 }
 0x7af   :  { %v352_v55 = vsub.f32 1.0, %v351_v54 }
 0x7b1   :  { %v353_v57 = vmul.f32 %v758_v53, %v352_v55 }
 0x7b3   :  { %v354_v59 = vadd.f32 %v758_v53, %v353_v57 }
 0x7b5   :  { %v358_v61 = vsel %vm357_vm5, %v758_v53, %v354_v59 }
 0x7b6   :  { %v363_v63 = vsel %vm360_vm6, %v362_v60, %v358_v61 }
 0x7b7   :  { %v365_v0 = vsel %vm926_vm4, %v760_v62, %v363_v63 }
 0x7b8   :  { %368 = vrot.lane.b32.xlu0 %v365_v0, %s822_s3  ;;  %v366_v3 = vmul.f32 %v365_v0, %v310_v38 }
 0x82a   :  { %v369_v1 = vpop.permute.xlu0 %368 }
 0x82b   :  { %v371_v2 = vmul.f32 %v369_v1, %v365_v0 }
 0x82d   :  { %373 = vrot.lane.b32.xlu1 %v371_v2, %s823_s13 }
 0x89f   :  { %v374_v4 = vpop.permute.xlu1 %373 }
 0x8a0   :  { %v376_v5 = vadd.f32 %v374_v4, %v366_v3 }
 0x8a2   :  { %761 = vtanh.f32 %v376_v5 }
 0x8a8   :  { %v762_v6 = vpop.eup %761 }
 0x8a9   :  { %379 = vrot.lane.b32.xlu2 %v762_v6, %s822_s3  ;;  %v99_v6 = vadd.f32 %v923_v11, %v957_v45 }
 0x903   :  { %v380_v7 = vpop.permute.xlu2 %379 }
 0x904   :  { %v382_v8 = vmul.f32 %v380_v7, %v365_v0 }
 0x906   :  { %386 = vrot.lane.b32.xlu0 %v382_v8, %s823_s13 }
 0x978   :  { %v387_v12 = vpop.permute.xlu0 %386 }
 0x979   :  { %712 = vmatmul.msk.f32.vlgmr.msra.gmra.mxu2 %vm122_vm8, %v387_v12 }
 0x9fc   :  { %v407_v15 = vpop.f32.mrf.mxu2 }
 0x9fd   :  { %v410_v16 = vadd.f32 %v407_v15, %v93_v14 }
 0x9ff   :  { %v713_v17 = vmul.f32 -1.442695, %v410_v16 }
 0xa01   :  { %763 = vpow2.f32 %v713_v17 }
 0xa07   :  { %v764_v18 = vpop.eup %763 }
 0xa08   :  { %v415_v19 = vadd.f32 1.0, %v764_v18 }
 0xa0a   :  { %765 = vrcp.f32 %v415_v19  ;;  %v427_v23 = vand.u32 2147483648, %v415_v19  ;;  %v425_v25 = vand.u32 2147483647, %v415_v19  ;;  %vm421_vm7 = vweird.f32 %v415_v19 }
 0xa0b   :  { %767 = vtanh.f32 %v410_v16 }
 0xa0c   :  { %v428_v28 = vor.u32 1.1754944e-38, %v427_v23  ;;  %vm426_vm10 = vcmp.eq.f32.partialorder %v425_v25, 8.507059e+37 }
 0xa10   :  { %v766_v20 = vpop.eup %765 }
 0xa11   :  { %v417_v21 = vmul.f32 %v766_v20, %v415_v19  ;;  %vm422_vm0 = vweird.f32 %v766_v20  ;;  %v768_v30 = vpop.eup %767 }
 0xa12   :  { %vm423_vm9 = vmor %vm421_vm7, %vm422_vm0 }
 0xa13   :  { %v418_v22 = vsub.f32 1.0, %v417_v21 }
 0xa15   :  { %v419_v24 = vmul.f32 %v766_v20, %v418_v22 }
 0xa17   :  { %v420_v27 = vadd.f32 %v766_v20, %v419_v24 }
 0xa19   :  { %v424_v29 = vsel %vm423_vm9, %v766_v20, %v420_v27 }
 0xa1a   :  { %v429_v31 = vsel %vm426_vm10, %v428_v28, %v424_v29 }
 0xa1b   :  { %v431_v32 = vsel %vm926_vm4, %v768_v30, %v429_v31 }
 0xa1c   :  { %434 = vrot.lane.b32.xlu1 %v431_v32, %s822_s3  ;;  %v432_v35 = vmul.f32 %v431_v32, %v376_v5 }
 0xa8e   :  { %v435_v33 = vpop.permute.xlu1 %434 }
 0xa8f   :  { %v437_v34 = vmul.f32 %v435_v33, %v431_v32 }
 0xa91   :  { %439 = vrot.lane.b32.xlu2 %v437_v34, %s823_s13 }
 0xaeb   :  { %v440_v36 = vpop.permute.xlu2 %439 }
 0xaec   :  { %v442_v37 = vadd.f32 %v440_v36, %v432_v35  ;;  %v102_v35 = vadd.f32 %v923_v11, %v959_v46 }
 0xaee   :  { %769 = vtanh.f32 %v442_v37 }
 0xaf4   :  { %v770_v38 = vpop.eup %769 }
 0xaf5   :  { %445 = vrot.lane.b32.xlu0 %v770_v38, %s822_s3 }
 0xb67   :  { %v446_v39 = vpop.permute.xlu0 %445 }
 0xb68   :  { %v448_v40 = vmul.f32 %v446_v39, %v431_v32 }
 0xb6a   :  { %452 = vrot.lane.b32.xlu1 %v448_v40, %s823_s13 }
 0xbdc   :  { %v453_v41 = vpop.permute.xlu1 %452 }
 0xbdd   :  { %714 = vmatmul.msk.f32.vlgmr.msrb.gmra.mxu3 %vm122_vm8, %v453_v41 }
 0xc60   :  { %v473_v43 = vpop.f32.mrf.mxu3 }
 0xc61   :  { %v476_v44 = vadd.f32 %v473_v43, %v96_v42 }
 0xc63   :  { %v715_v47 = vmul.f32 -1.442695, %v476_v44 }
 0xc65   :  { %771 = vpow2.f32 %v715_v47 }
 0xc6b   :  { %v772_v48 = vpop.eup %771 }
 0xc6c   :  { %v481_v49 = vadd.f32 1.0, %v772_v48 }
 0xc6e   :  { %773 = vrcp.f32 %v481_v49  ;;  %v493_v53 = vand.u32 2147483648, %v481_v49  ;;  %v491_v55 = vand.u32 2147483647, %v481_v49  ;;  %vm487_vm12 = vweird.f32 %v481_v49 }
 0xc6f   :  { %775 = vtanh.f32 %v476_v44 }
 0xc70   :  { %v494_v57 = vor.u32 1.1754944e-38, %v493_v53  ;;  %vm492_vm14 = vcmp.eq.f32.partialorder %v491_v55, 8.507059e+37 }
 0xc74   :  { %v774_v50 = vpop.eup %773 }
 0xc75   :  { %v483_v51 = vmul.f32 %v774_v50, %v481_v49  ;;  %vm488_vm11 = vweird.f32 %v774_v50  ;;  %v776_v58 = vpop.eup %775 }
 0xc76   :  { %vm489_vm13 = vmor %vm487_vm12, %vm488_vm11 }
 0xc77   :  { %v484_v52 = vsub.f32 1.0, %v483_v51 }
 0xc79   :  { %v485_v54 = vmul.f32 %v774_v50, %v484_v52 }
 0xc7b   :  { %v486_v56 = vadd.f32 %v774_v50, %v485_v54 }
 0xc7d   :  { %v490_v9 = vsel %vm489_vm13, %v774_v50, %v486_v56 }
 0xc7e   :  { %v495_v59 = vsel %vm492_vm14, %v494_v57, %v490_v9 }
 0xc7f   :  { %v497_v60 = vsel %vm926_vm4, %v776_v58, %v495_v59  ;;  %v650_v58 = vld [vmem:[%s1054_s4 + $0x18] sm:$0xff]  ;;  %v648_v59 = vld [vmem:[%s1054_s4 + $0x8] sm:$0xff] }
 0xc80   :  { %500 = vrot.lane.b32.xlu2 %v497_v60, %s822_s3  ;;  %v498_v63 = vmul.f32 %v497_v60, %v442_v37  ;;  %672 = vmatpush.msra.mxu3 %v650_v58 }
 0xc82   :  { %673 = vmatpush.msra.mxu3 %v649_v26 }
 0xc84   :  { %674 = vmatpush.msra.mxu3 %v648_v59 }
 0xcda   :  { %v501_v61 = vpop.permute.xlu2 %500 }
 0xcdb   :  { %v503_v62 = vmul.f32 %v501_v61, %v497_v60 }
 0xcdd   :  { %505 = vrot.lane.b32.xlu0 %v503_v62, %s823_s13 }
 0xd4f   :  { %v506_v0 = vpop.permute.xlu0 %505 }
 0xd50   :  { %v508_v1 = vadd.f32 %v506_v0, %v498_v63  ;;  %v730_v0 = vld [vmem:[%s1055_s5] ss:$0 sm:$0xff] }
 0xd52   :  { %777 = vtanh.f32 %v508_v1 }
 0xd58   :  { %v778_v2 = vpop.eup %777 }
 0xd59   :  { %511 = vrot.lane.b32.xlu1 %v778_v2, %s822_s3 }
 0xdcb   :  { %v512_v3 = vpop.permute.xlu1 %511 }
 0xdcc   :  { %v514_v4 = vmul.f32 %v512_v3, %v497_v60  ;;  %v647_v60 = vld [vmem:[%s1054_s4] sm:$0xff] }
 0xdcd   :  { %675 = vmatpush.msra.mxu3 %v647_v60 }
 0xdce   :  { %518 = vrot.lane.b32.xlu2 %v514_v4, %s823_s13 }
 0xe28   :  { %v519_v5 = vpop.permute.xlu2 %518 }
 0xe29   :  { %716 = vmatmul.msk.f32.vlgmr.msrb.gmra.mxu1 %vm122_vm8, %v519_v5 }
 0xea6   :  { %v539_v7 = vpop.f32.mrf.mxu1 }
 0xea7   :  { %v542_v8 = vadd.f32 %v539_v7, %v99_v6 }
 0xea9   :  { %v717_v10 = vmul.f32 -1.442695, %v542_v8 }
 0xeab   :  { %779 = vpow2.f32 %v717_v10 }
 0xeb1   :  { %v780_v12 = vpop.eup %779 }
 0xeb2   :  { %v547_v13 = vadd.f32 1.0, %v780_v12 }
 0xeb4   :  { %781 = vrcp.f32 %v547_v13  ;;  %v559_v17 = vand.u32 2147483648, %v547_v13  ;;  %v557_v19 = vand.u32 2147483647, %v547_v13  ;;  %vm553_vm1 = vweird.f32 %v547_v13 }
 0xeb5   :  { %783 = vtanh.f32 %v542_v8 }
 0xeb6   :  { %v560_v21 = vor.u32 1.1754944e-38, %v559_v17  ;;  %vm558_vm3 = vcmp.eq.f32.partialorder %v557_v19, 8.507059e+37 }
 0xeba   :  { %v782_v14 = vpop.eup %781 }
 0xebb   :  { %v549_v15 = vmul.f32 %v782_v14, %v547_v13  ;;  %vm554_vm15 = vweird.f32 %v782_v14  ;;  %v784_v22 = vpop.eup %783 }
 0xebc   :  { %vm555_vm2 = vmor %vm553_vm1, %vm554_vm15 }
 0xebd   :  { %v550_v16 = vsub.f32 1.0, %v549_v15 }
 0xebf   :  { %v551_v18 = vmul.f32 %v782_v14, %v550_v16 }
 0xec1   :  { %v552_v20 = vadd.f32 %v782_v14, %v551_v18 }
 0xec3   :  { %v556_v45 = vsel %vm555_vm2, %v782_v14, %v552_v20 }
 0xec4   :  { %v561_v23 = vsel %vm558_vm3, %v560_v21, %v556_v45 }
 0xec5   :  { %v563_v24 = vsel %vm926_vm4, %v784_v22, %v561_v23 }
 0xec6   :  { %566 = vrot.lane.b32.xlu0 %v563_v24, %s822_s3  ;;  %v564_v28 = vmul.f32 %v563_v24, %v508_v1 }
 0xf38   :  { %v567_v25 = vpop.permute.xlu0 %566 }
 0xf39   :  { %v569_v27 = vmul.f32 %v567_v25, %v563_v24 }
 0xf3b   :  { %571 = vrot.lane.b32.xlu1 %v569_v27, %s823_s13 }
 0xfad   :  { %v572_v29 = vpop.permute.xlu1 %571 }
 0xfae   :  { %v574_v30 = vadd.f32 %v572_v29, %v564_v28 }
 0xfb0   :  { %785 = vtanh.f32 %v574_v30 }
 0xfb6   :  { %v786_v31 = vpop.eup %785 }
 0xfb7   :  { %577 = vrot.lane.b32.xlu2 %v786_v31, %s822_s3 }
0x1011   :  { %v578_v32 = vpop.permute.xlu2 %577 }
0x1012   :  { %v580_v33 = vmul.f32 %v578_v32, %v563_v24 }
0x1014   :  { %584 = vrot.lane.b32.xlu0 %v580_v33, %s823_s13 }
0x1086   :  { %v585_v34 = vpop.permute.xlu0 %584 }
0x1087   :  { %718 = vmatmul.msk.f32.vlgmr.msrb.gmra.mxu2 %vm122_vm8, %v585_v34 }
0x110a   :  { %v605_v36 = vpop.f32.mrf.mxu2 }
0x110b   :  { %v608_v37 = vadd.f32 %v605_v36, %v102_v35 }
0x110d   :  { %v719_v38 = vmul.f32 -1.442695, %v608_v37 }
0x110f   :  { %787 = vpow2.f32 %v719_v38 }
0x1115   :  { %v788_v39 = vpop.eup %787 }
0x1116   :  { %v613_v40 = vadd.f32 1.0, %v788_v39 }
0x1118   :  { %789 = vrcp.f32 %v613_v40  ;;  %v625_v44 = vand.u32 2147483648, %v613_v40  ;;  %v623_v48 = vand.u32 2147483647, %v613_v40  ;;  %vm619_vm6 = vweird.f32 %v613_v40 }
0x1119   :  { %791 = vtanh.f32 %v608_v37 }
0x111a   :  { %v626_v50 = vor.u32 1.1754944e-38, %v625_v44  ;;  %vm624_vm7 = vcmp.eq.f32.partialorder %v623_v48, 8.507059e+37 }
0x111e   :  { %v790_v41 = vpop.eup %789 }
0x111f   :  { %v615_v42 = vmul.f32 %v790_v41, %v613_v40  ;;  %vm620_vm5 = vweird.f32 %v790_v41  ;;  %v792_v46 = vpop.eup %791 }
0x1120   :  { %vm621_vm0 = vmor %vm619_vm6, %vm620_vm5 }
0x1121   :  { %v616_v43 = vsub.f32 1.0, %v615_v42 }
0x1123   :  { %v617_v47 = vmul.f32 %v790_v41, %v616_v43 }
0x1125   :  { %v618_v49 = vadd.f32 %v790_v41, %v617_v47 }
0x1127   :  { %v622_v11 = vsel %vm621_vm0, %v790_v41, %v618_v49 }
0x1128   :  { %v627_v51 = vsel %vm624_vm7, %v626_v50, %v622_v11 }
0x1129   :  { %v629_v52 = vsel %vm926_vm4, %v792_v46, %v627_v51 }
0x112a   :  { %632 = vrot.lane.b32.xlu1 %v629_v52, %s822_s3  ;;  %v630_v55 = vmul.f32 %v629_v52, %v574_v30 }
0x119c   :  { %v633_v53 = vpop.permute.xlu1 %632 }
0x119d   :  { %v635_v54 = vmul.f32 %v633_v53, %v629_v52 }
0x119f   :  { %637 = vrot.lane.b32.xlu2 %v635_v54, %s823_s13 }
0x11f9   :  { %v638_v56 = vpop.permute.xlu2 %637 }
0x11fa   :  { %v640_v57 = vadd.f32 %v638_v56, %v630_v55 }
0x11fc   :  { %793 = vtanh.f32 %v640_v57 }
0x1202   :  { %v794_v9 = vpop.eup %793 }
0x1203   :  { %643 = vrot.lane.b32.xlu0 %v794_v9, %s822_s3  ;;  %s688_s3 = sshll.u32 %s1056_s6, 4  ;;  %s689_s3 = int_to_ptr.hbm [resolvable:$true] %s688_s3 }
0x1275   :  { %v644_v61 = vpop.permute.xlu0 %643 }
0x1276   :  { %v646_v62 = vmul.f32 %v644_v61, %v629_v52 }
0x1278   :  { %656 = vrot.lane.b32.xlu1 %v646_v62, %s823_s13 }
0x12ea   :  { %v657_v63 = vpop.permute.xlu1 %656 }
0x12eb   :  { %720 = vmatmul.msk.f32.vlgmr.msra.gmra.mxu3 %vm122_vm8, %v657_v63 }
0x136e   :  { %v677_v1 = vpop.f32.mrf.mxu3 }
0x136f   :  { %v678_v2 = vadd.f32 %v730_v0, %v677_v1 }
0x1371   :  { %680 = vst [vmem:[#allocation3] sm:$0xff] %v678_v2 }
0x1372   :  { %691 = dma.vmem_to_hbm [thread:$0]  %s687_s11, 128, %s689_s3, [#allocation4]  }
0x1373   :  { %819 = dma.done.wait [#allocation4], 128  }
0x1374   :  { %820 = vsyncadd [#allocation4], 4294967168 }
0x1375   :  { %696 = vsyncpa [#allocation4], 1 }

</bundles_post_ra>
